<compile_context>
chip_gen: v6e
topology: v6e:2x2x1
jax: 0.10.0
libtpu: 0.0.40
codegen_flags: <defaults>
</compile_context>

<pallas_src>
import functools

import jax
import jax.numpy as jnp
from jax import lax
from jax.experimental import pallas as pl
from jax.experimental.pallas import tpu as pltpu


def _round_up(x, m):
    return ((x + m - 1) // m) * m


def _physical_vmem_bytes():
    """Per-core VMEM capacity; falls back to the smallest current part (v7x)."""
    try:
        return int(pltpu.get_tpu_info().vmem_capacity_bytes)
    except Exception:
        return 64 << 20


def _pad_k_and_tk(k):
    """Zero-pad K up to a 128-multiple; pick an aligned K tile (<=512) dividing it."""
    k_p = _round_up(k, 128)
    if k_p <= 512:
        return k_p, k_p                      # one aligned, unmasked K step
    for tk in (512, 256, 128):
        if k_p % tk == 0:
            return k_p, tk
    return k_p, 128                          # unreachable: k_p % 128 == 0


def _largest_n_tile(cout_p, max_tn):
    """Largest 128-multiple divisor of cout_p that is <= max_tn (>=128)."""
    best = 128
    t = 128
    while t <= min(cout_p, max_tn):
        if cout_p % t == 0:
            best = t
        t += 128
    return best


def _vmem_need(tm, tn, tk, in_b, out_b):
    """Kernel VMEM footprint (double-buffered tiles + f32 accumulator)."""
    return (2 * tm * tk * in_b       # patches tile
            + 2 * tk * tn * in_b     # weight tile
            + 2 * tn * 4             # bias tile (f32)
            + 2 * tm * tn * out_b    # output tile
            + tm * tn * 4)           # accumulator scratch


def _fused_gemm_bias_kernel(p_ref, w_ref, b_ref, o_ref, acc_ref):
    # p_ref: (TM, TK) bf16   w_ref: (TK, TN) bf16   b_ref: (1, TN) f32
    # o_ref: (TM, TN) out-dtype   acc_ref: (TM, TN) f32 scratch
    @pl.when(pl.program_id(2) == 0)
    def _init():
        acc_ref[...] = jnp.zeros_like(acc_ref)

    acc_ref[...] += jnp.dot(p_ref[...], w_ref[...],
                            preferred_element_type=jnp.float32)

    @pl.when(pl.program_id(2) == pl.num_programs(2) - 1)
    def _epilogue():
        o_ref[...] = (acc_ref[...] + b_ref[...]).astype(o_ref.dtype)


def _im2col_nhwc(x_nhwc, kh, kw, stride, padding):
    """Extract conv patches from NHWC input.

    Returns (N*OH*OW, KH*KW*Cin), OH, OW.  Feature order is (KH, KW, Cin) so
    the stack+reshape is layout-natural (no large transpose).
    """
    n, h, w, c = x_nhwc.shape
    sh, sw = stride
    ph, pw = padding
    xp = jnp.pad(x_nhwc, ((0, 0), (ph, ph), (pw, pw), (0, 0)))
    oh = (h + 2 * ph - kh) // sh + 1
    ow = (w + 2 * pw - kw) // sw + 1
    cols = [
        xp[:, ikh: ikh + sh * oh: sh, ikw: ikw + sw * ow: sw, :]  # (N,OH,OW,C)
        for ikh in range(kh)
        for ikw in range(kw)
    ]
    patches = jnp.stack(cols, axis=3)                 # (N, OH, OW, KH*KW, C)
    return patches.reshape(n * oh * ow, kh * kw * c), oh, ow


@functools.partial(jax.jit, static_argnames=("stride", "padding"))
def lora_conv2d_forward(x, w_base, b_base, lora_down, lora_up, scale_one,
                        stride=(1, 1), padding=(1, 1)):
    """Forward of LoraConv2d (weight_mode='one', num_loras>1), NCHW in/out."""
    compute_dtype = jnp.bfloat16
    out_dtype = x.dtype          # keep module semantics (bf16 here if consumer allows)
    n, cin, h, w = x.shape
    cout, _, kh, kw = w_base.shape

    # --- get_weights_one: scale-weighted sum of per-lora weights (JAX glue) ---
    down_w = jnp.einsum("l,lrchw->rchw", scale_one, lora_down)          # (R,Cin,KH,KW)
    up_w = jnp.einsum("l,lorhw->orhw", scale_one, lora_up)[:, :, 0, 0]  # (Cout,R)

    # --- fold LoRA into the base conv weight (f32, tiny GEMM) ---
    # conv1x1(conv(x, down), up) == conv(x, einsum('or,rchw->ochw', up, down))
    w_eff = w_base + jnp.einsum("or,rchw->ochw", up_w, down_w)          # (Cout,Cin,KH,KW)

    # --- im2col (NHWC, feature order (KH,KW,Cin)), bf16 ---
    x_nhwc = jnp.transpose(x, (0, 2, 3, 1)).astype(compute_dtype)
    patches, oh, ow = _im2col_nhwc(x_nhwc, kh, kw, stride, padding)     # (M, K)
    m, k = patches.shape

    # --- pad K to an aligned tile multiple, M to a 16-multiple (bf16 rows) ---
    k_p, tk = _pad_k_and_tk(k)
    m_p = _round_up(m, 16)
    if (m_p, k_p) != (m, k):
        patches = jnp.pad(patches, ((0, m_p - m), (0, k_p - k)))

    # --- weight / bias as GEMM operands; Cout padded to lane-dense width ---
    w_mat = jnp.transpose(w_eff, (2, 3, 1, 0)).reshape(k, cout)          # (K, Cout)
    cout_p = _round_up(cout, 128)
    if (k_p, cout_p) != (k, cout):
        w_mat = jnp.pad(w_mat, ((0, k_p - k), (0, cout_p - cout)))
    w_mat = w_mat.astype(compute_dtype)
    bias = b_base if cout_p == cout else jnp.pad(b_base, (0, cout_p - cout))
    bias2d = bias.reshape(1, cout_p).astype(jnp.float32)

    # --- tile selection under a generation-aware VMEM budget ---
    in_b = jnp.dtype(compute_dtype).itemsize
    out_b = jnp.dtype(out_dtype).itemsize
    phys_vmem = _physical_vmem_bytes()
    vmem_cap = min(phys_vmem - (16 << 20), 100 << 20)   # ~48 MiB v7x, ~100 MiB v5e/v6e

    tm = min(1024, m_p)
    tn = cout_p                      # grid_j == 1: patches streamed from HBM once
    while _vmem_need(tm, tn, tk, in_b, out_b) > vmem_cap and tm > 256:
        tm = max(256, tm // 2)
    while _vmem_need(tm, tn, tk, in_b, out_b) > vmem_cap and tn > 256:
        tn = _largest_n_tile(cout_p, tn // 2)            # >=256 divisor when possible
    while (_vmem_need(tm, tn, tk, in_b, out_b) > vmem_cap
           and tk > 128 and tk % 256 == 0):
        tk //= 2
    while _vmem_need(tm, tn, tk, in_b, out_b) > vmem_cap and tm > 16:
        tm = max(16, tm // 2)

    # On 2-TensorCore parts, make sure the "parallel" M axis has >=2 tiles when
    # grid_j == 1, so both cores get work.
    multi_core = phys_vmem <= (64 << 20)
    try:
        multi_core = multi_core or ("v4" in jax.devices()[0].device_kind.lower())
    except Exception:
        pass
    grid_i = pl.cdiv(m_p, tm)
    grid_j = cout_p // tn
    if multi_core and grid_j == 1 and grid_i < 2 and m_p >= 32:
        tm = max(16, _round_up(-(-m_p // 2), 16))
        grid_i = pl.cdiv(m_p, tm)
    grid = (grid_i, grid_j, k_p // tk)

    need = _vmem_need(tm, tn, tk, in_b, out_b)
    vmem_limit = int(min(max(need + (8 << 20), 32 << 20), vmem_cap))

    out = pl.pallas_call(
        _fused_gemm_bias_kernel,
        out_shape=jax.ShapeDtypeStruct((m_p, cout_p), out_dtype),
        grid_spec=pltpu.PrefetchScalarGridSpec(
            num_scalar_prefetch=0,
            grid=grid,
            in_specs=[
                pl.BlockSpec((tm, tk), lambda i, j, kk: (i, kk)),   # patches
                pl.BlockSpec((tk, tn), lambda i, j, kk: (kk, j)),   # folded weight
                pl.BlockSpec((1, tn), lambda i, j, kk: (0, j)),     # bias
            ],
            out_specs=pl.BlockSpec((tm, tn), lambda i, j, kk: (i, j)),
            scratch_shapes=[pltpu.VMEM((tm, tn), jnp.float32)],
        ),
        compiler_params=pltpu.CompilerParams(
            dimension_semantics=("parallel", "parallel", "arbitrary"),
            vmem_limit_bytes=vmem_limit,
        ),
    )(patches, w_mat, bias2d)

    # (M_p, Cout_p) -> (N, OH, OW, Cout) -> NCHW; the M/Cout pad slices fuse
    # into the transpose that the NCHW API requires anyway.
    if m_p != m:
        out = out[:m]
    out = out.reshape(n, oh, ow, cout_p)[:, :, :, :cout]
    return jnp.transpose(out, (0, 3, 1, 2)).astype(x.dtype)


def _reference_forward(x, w_base, b_base, lora_down, lora_up, scale_one,
                       stride, padding):
    """Pure-JAX f32 reference matching the PyTorch module semantics."""
    dn = ("NCHW", "OIHW", "NCHW")
    pad = [(padding[0], padding[0]), (padding[1], padding[1])]
    down_w = jnp.einsum("l,lrchw->rchw", scale_one, lora_down)
    up_w = jnp.einsum("l,lorhw->orhw", scale_one, lora_up)
    orig = lax.conv_general_dilated(x, w_base, stride, pad, dimension_numbers=dn)
    orig = orig + b_base[None, :, None, None]
    d = lax.conv_general_dilated(x, down_w, stride, pad, dimension_numbers=dn)
    resid = lax.conv_general_dilated(d, up_w, (1, 1), [(0, 0), (0, 0)],
                                     dimension_numbers=dn)
    return orig + resid


if __name__ == "__main__":
    key = jax.random.PRNGKey(0)
    k1, k2, k3, k4, k5 = jax.random.split(key, 5)

    # small shapes consistent with the module
    N, Cin, H, W = 2, 4, 16, 16
    Cout, KH, KW = 8, 3, 3
    rank, num_loras = 8, 2
    stride, padding = (1, 1), (1, 1)

    # base Conv2d params (deterministic synthetic init)
    w_base = 0.1 * jax.random.normal(k1, (Cout, Cin, KH, KW), jnp.float32)
    b_base = 0.1 * jax.random.normal(k2, (Cout,), jnp.float32)

    # LoRA params: lora_down ~ randn/rank (as in __init__). The module inits
    # lora_up to zeros (residual path would be identically 0); use small
    # deterministic randoms instead so the folded residual is exercised.
    lora_down = jax.random.normal(k3, (num_loras, rank, Cin, KH, KW), jnp.float32) / rank
    lora_up = 0.1 * jax.random.normal(k4, (num_loras, Cout, rank, 1, 1), jnp.float32)
    # each_scale_one = ones(num_loras) / num_loras  (weight_mode='one')
    scale_one = jnp.ones((num_loras,), jnp.float32) / num_loras

    x = jax.random.normal(k5, (N, Cin, H, W), jnp.float32)

    out = lora_conv2d_forward(x, w_base, b_base, lora_down, lora_up, scale_one,
                              stride, padding)
    out = jax.block_until_ready(out)

    ref = _reference_forward(x, w_base, b_base, lora_down, lora_up, scale_one,
                             stride, padding)
    assert out.shape == ref.shape == (N, Cout, H, W), (out.shape, ref.shape)
    # bf16 operands (f32 accumulation) -> relaxed tolerance vs the f32 reference.
    # NOTE: error grows ~sqrt(K)*eps_bf16; re-validate tolerance at production K.
    assert jnp.allclose(out, ref, atol=3e-2, rtol=3e-2), float(
        jnp.max(jnp.abs(out - ref)))

    print("KERNEL_OK")
</pallas_src>

<mosaic_0001>
module attributes {stable_mosaic.version = 11 : i64} {
  func.func @_fused_gemm_bias_kernel(%arg0: i32, %arg1: i32, %arg2: i32, %arg3: memref<256x128xbf16, #tpu.memory_space<vmem>>, %arg4: memref<128x128xbf16, #tpu.memory_space<vmem>>, %arg5: memref<1x128xf32, #tpu.memory_space<vmem>>, %arg6: memref<256x128xf32, #tpu.memory_space<vmem>>, %arg7: memref<256x128xf32, #tpu.memory_space<vmem>>) attributes {dimension_semantics = [#tpu.dimension_semantics<parallel>, #tpu.dimension_semantics<parallel>, #tpu.dimension_semantics<arbitrary>], iteration_bounds = array<i64: 2, 1, 1>, scalar_prefetch = 0 : i64, scratch_operands = 1 : i64, tpu.core_type = #tpu.core_type<tc>, window_params = [{transform_indices = @transform_0, window_bounds = array<i64: 256, 128>}, {transform_indices = @transform_1, window_bounds = array<i64: 128, 128>}, {transform_indices = @transform_2, window_bounds = array<i64: 1, 128>}, {transform_indices = @transform_3, window_bounds = array<i64: 256, 128>}]} {
    %c0_i32 = arith.constant 0 : i32
    %0 = arith.cmpi eq, %arg2, %c0_i32 : i32
    %1 = arith.extui %0 : i1 to i32
    %c0_i32_0 = arith.constant 0 : i32
    %2 = arith.cmpi ne, %1, %c0_i32_0 : i32
    scf.if %2 {
      %cst_10 = arith.constant 0.000000e+00 : f32
      %12 = vector.broadcast %cst_10 : f32 to vector<256x128xf32>
      %c0_11 = arith.constant 0 : index
      %c0_12 = arith.constant 0 : index
      %13 = vector.load %arg7[%c0_11, %c0_12] : memref<256x128xf32, #tpu.memory_space<vmem>>, vector<256x128xf32>
      tpu.vector_store %arg7[%c0_11, %c0_12], %12 {strides = array<i32>} : memref<256x128xf32, #tpu.memory_space<vmem>>, vector<256x128xf32>,
    } else {
    }
    %c0 = arith.constant 0 : index
    %c0_1 = arith.constant 0 : index
    %3 = vector.load %arg7[%c0, %c0_1] : memref<256x128xf32, #tpu.memory_space<vmem>>, vector<256x128xf32>
    %c0_2 = arith.constant 0 : index
    %c0_3 = arith.constant 0 : index
    %4 = vector.load %arg3[%c0_2, %c0_3] : memref<256x128xbf16, #tpu.memory_space<vmem>>, vector<256x128xbf16>
    %c0_4 = arith.constant 0 : index
    %c0_5 = arith.constant 0 : index
    %5 = vector.load %arg4[%c0_4, %c0_5] : memref<128x128xbf16, #tpu.memory_space<vmem>>, vector<128x128xbf16>
    %cst = arith.constant dense<0.000000e+00> : vector<256x128xf32>
    %6 = tpu.matmul %4, %5, %cst {dimension_numbers = #tpu.dot_dimension_numbers<[1], [0], [0], [1], [0, 0, 1, 1], [], []>} : vector<256x128xbf16>, vector<128x128xbf16>, vector<256x128xf32> -> vector<256x128xf32>
    %7 = arith.addf %3, %6 : vector<256x128xf32>
    %c0_6 = arith.constant 0 : index
    %c0_7 = arith.constant 0 : index
    %8 = vector.load %arg7[%c0_6, %c0_7] : memref<256x128xf32, #tpu.memory_space<vmem>>, vector<256x128xf32>
    tpu.vector_store %arg7[%c0_6, %c0_7], %7 {strides = array<i32>} : memref<256x128xf32, #tpu.memory_space<vmem>>, vector<256x128xf32>,
    %c0_i32_8 = arith.constant 0 : i32
    %9 = arith.cmpi eq, %arg2, %c0_i32_8 : i32
    %10 = arith.extui %9 : i1 to i32
    %c0_i32_9 = arith.constant 0 : i32
    %11 = arith.cmpi ne, %10, %c0_i32_9 : i32
    scf.if %11 {
      %c0_10 = arith.constant 0 : index
      %c0_11 = arith.constant 0 : index
      %12 = vector.load %arg7[%c0_10, %c0_11] : memref<256x128xf32, #tpu.memory_space<vmem>>, vector<256x128xf32>
      %c0_12 = arith.constant 0 : index
      %c0_13 = arith.constant 0 : index
      %13 = vector.load %arg5[%c0_12, %c0_13] : memref<1x128xf32, #tpu.memory_space<vmem>>, vector<1x128xf32>
      %14 = vector.broadcast %13 : vector<1x128xf32> to vector<256x128xf32>
      %15 = arith.addf %12, %14 : vector<256x128xf32>
      %c0_14 = arith.constant 0 : index
      %c0_15 = arith.constant 0 : index
      %16 = vector.load %arg6[%c0_14, %c0_15] : memref<256x128xf32, #tpu.memory_space<vmem>>, vector<256x128xf32>
      tpu.vector_store %arg6[%c0_14, %c0_15], %15 {strides = array<i32>} : memref<256x128xf32, #tpu.memory_space<vmem>>, vector<256x128xf32>,
    } else {
    }
    return
  }
  func.func @transform_0(%arg0: i32, %arg1: i32, %arg2: i32) -> (i32, i32) {
    %c0_i32 = arith.constant 0 : i32
    return %arg0, %arg2 : i32, i32
  }
  func.func @transform_1(%arg0: i32, %arg1: i32, %arg2: i32) -> (i32, i32) {
    %c0_i32 = arith.constant 0 : i32
    return %arg2, %arg1 : i32, i32
  }
  func.func @transform_2(%arg0: i32, %arg1: i32, %arg2: i32) -> (i32, i32) {
    %c0_i32 = arith.constant 0 : i32
    %c0_i32_0 = arith.constant 0 : i32
    return %c0_i32, %arg1 : i32, i32
  }
  func.func @transform_3(%arg0: i32, %arg1: i32, %arg2: i32) -> (i32, i32) {
    %c0_i32 = arith.constant 0 : i32
    return %arg0, %arg1 : i32, i32
  }
}

</mosaic_0001>

<bundles_post_ra>
// kernel: lora_conv2d_forward.1
= control target key start
LH: loop header
LB: loop body
LE: loop exit
PB: predicated region body
PF: predicated region fallthrough
CT: control target
= control target key end

     0   :  { %s1180_s12 = smov 0   ;;  %s1182_s13 = smov 0   ;;  %s1330_s0 = inlined_call_operand.vmem [shape: bf16[512,128], index: 0, kind: input, shape index: {}]   ;;  %s1331_s1 = inlined_call_operand.vmem [shape: bf16[128,128], index: 1, kind: input, shape index: {}]   ;;  %s1332_s2 = inlined_call_operand.vmem [shape: f32[1,128], index: 2, kind: input, shape index: {}]   ;;  %s1333_s3 = inlined_call_operand.vmem [shape: f32[512,128], index: 3, kind: output, shape index: {}]  }
   0x1   :  { %s1184_s14 = smov 0  }
   0x2 LB: > { %s32_s15 = sadd.s32 1, %s1154_s13  ;;  %p968_p0 = scmp.ge.s32.totalorder %s1158_s14, 1  ;;  %s1158_s14 = sphi %s1184_s14, %s13_s14   ;;  %s1154_s13 = sphi %s1182_s13, %s1335_s13   ;;  %s1150_s12 = sphi %s1180_s12, %s1334_s12  }
   0x3   : > { %p34_p1 = scmp.ge.s32.totalorder %s32_s15, 2  ;;  %p188_p2 = scmp.lt.s32.totalorder %s1158_s14, 3 }
   0x5   : > { %s1337_s15 = smov (%p34_p1, %s32_s15), 0  ;;  %p189_p3 = pnand %p968_p0, %p188_p2 }
   0x6   : > { %s969_s18 = sshll.u32 (!%p189_p3), %s1150_s12, 5 }
   0x7   : > { %192 = sbr.rel (%p189_p3) target bundleno = 271 (0x10f), region = 32  ;;  %p230_p4 = scmp.lt.s32.totalorder (!%p189_p3), %s969_s18, 63 }
   0xc   : > { %v1112_v0 = vld [vmem:[%s1331_s1 + $0x38] sm:$0xff]   ;;  %v1113_v1 = vld [vmem:[%s1331_s1 + $0x30] sm:$0xff]   ;;  %s1339_s18 = smov (!%p230_p4, %s969_s18), 63  ;;  %v1114_v2 = vld [vmem:[%s1331_s1 + $0x28] sm:$0xff]  }
   0xd   : > { %1024 = vmatprep.subr.bf16.mxu0 %v1112_v0  ;;  %1072 = vmatprep.subr.bf16.mxu1 %v1112_v0  ;;  %s970_s23 = sshll.u32 %s1339_s18, 2  ;;  %v1115_v3 = vld [vmem:[%s1331_s1 + $0x20] sm:$0xff]   ;;  %v1116_v6 = vld [vmem:[%s1331_s1 + $0x18] sm:$0xff]   ;;  %v1117_v7 = vld [vmem:[%s1331_s1 + $0x10] sm:$0xff]   ;;  %s972_s10 = sshll.u32 %s1339_s18, 3 }
   0xe   : > { %1025 = vmatpush3.bf16.msra.mxu0 %v1112_v0  ;;  %1080 = vmatpush3.bf16.msra.mxu1 %v1112_v0  ;;  %s1213_s26 = scalar_lea.vmem %s1330_s0, %s970_s23  ;;  %v1118_v8 = vld [vmem:[%s1331_s1 + $0x8] sm:$0xff]   ;;  %v1119_v9 = vld [vmem:[%s1331_s1] sm:$0xff]   ;;  %s1255_s19 = scalar_lea.vmem %s1333_s3, %s972_s10 }
   0xf   : > { %1026 = vmatprep.subr.bf16.mxu0 %v1113_v1  ;;  %1073 = vmatprep.subr.bf16.mxu1 %v1113_v1  ;;  %v1120_v4 = vld [vmem:[%s1213_s26] sm:$0xff]   ;;  %v1122_v10 = vld [vmem:[%s1213_s26 + $0x8] sm:$0xff]   ;;  %v1124_v12 = vld [vmem:[%s1213_s26 + $0x10] sm:$0xff]  }
  0x10   : > { %v1121_v5 = vld [vmem:[%s1213_s26 + $0x40] sm:$0xff]   ;;  %1040 = vmatprep.mubr.bf16.mxu0 %v1120_v4  ;;  %v1123_v11 = vld [vmem:[%s1213_s26 + $0x48] sm:$0xff]   ;;  %v1125_v13 = vld [vmem:[%s1213_s26 + $0x50] sm:$0xff]  }
  0x11   : > { %1056 = vmatprep.mubr.bf16.mxu1 %v1121_v5  ;;  %v1126_v14 = vld [vmem:[%s1213_s26 + $0x18] sm:$0xff]   ;;  %v1128_v16 = vld [vmem:[%s1213_s26 + $0x20] sm:$0xff]   ;;  %v1130_v18 = vld [vmem:[%s1213_s26 + $0x28] sm:$0xff]  }
  0x12   : > { %1027 = vmatpush3.bf16.msra.mxu0 %v1113_v1  ;;  %1081 = vmatpush3.bf16.msra.mxu1 %v1113_v1  ;;  %v1127_v15 = vld [vmem:[%s1213_s26 + $0x58] sm:$0xff]   ;;  %v1129_v17 = vld [vmem:[%s1213_s26 + $0x60] sm:$0xff]   ;;  %v1131_v19 = vld [vmem:[%s1213_s26 + $0x68] sm:$0xff]  }
  0x13   : > { %1028 = vmatprep.subr.bf16.mxu0 %v1114_v2  ;;  %1074 = vmatprep.subr.bf16.mxu1 %v1114_v2  ;;  %v1132_v20 = vld [vmem:[%s1213_s26 + $0x30] sm:$0xff]   ;;  %v1134_v22 = vld [vmem:[%s1213_s26 + $0x38] sm:$0xff]   ;;  %v1250_v24 = vld [vmem:[%s1332_s2] ss:$0 sm:$0xff] }
  0x14   : > { %v1133_v21 = vld [vmem:[%s1213_s26 + $0x70] sm:$0xff]   ;;  %v1135_v23 = vld [vmem:[%s1213_s26 + $0x78] sm:$0xff]  }
  0x16   : > { %1029 = vmatpush3.bf16.msra.mxu0 %v1114_v2  ;;  %1082 = vmatpush3.bf16.msra.mxu1 %v1114_v2 }
  0x17   : > { %1030 = vmatprep.subr.bf16.mxu0 %v1115_v3  ;;  %1075 = vmatprep.subr.bf16.mxu1 %v1115_v3 }
  0x1a   : > { %1031 = vmatpush3.bf16.msra.mxu0 %v1115_v3  ;;  %1083 = vmatpush3.bf16.msra.mxu1 %v1115_v3 }
  0x1b   : > { %1032 = vmatprep.subr.bf16.mxu0 %v1116_v6  ;;  %1076 = vmatprep.subr.bf16.mxu1 %v1116_v6 }
  0x1e   : > { %1033 = vmatpush3.bf16.msra.mxu0 %v1116_v6  ;;  %1084 = vmatpush3.bf16.msra.mxu1 %v1116_v6 }
  0x1f   : > { %1034 = vmatprep.subr.bf16.mxu0 %v1117_v7  ;;  %1077 = vmatprep.subr.bf16.mxu1 %v1117_v7 }
  0x22   : > { %1035 = vmatpush3.bf16.msra.mxu0 %v1117_v7  ;;  %1085 = vmatpush3.bf16.msra.mxu1 %v1117_v7 }
  0x23   : > { %1036 = vmatprep.subr.bf16.mxu0 %v1118_v8  ;;  %1078 = vmatprep.subr.bf16.mxu1 %v1118_v8 }
  0x26   : > { %1037 = vmatpush3.bf16.msra.mxu0 %v1118_v8  ;;  %1086 = vmatpush3.bf16.msra.mxu1 %v1118_v8 }
  0x27   : > { %1038 = vmatprep.subr.bf16.mxu0 %v1119_v9  ;;  %1079 = vmatprep.subr.bf16.mxu1 %v1119_v9 }
  0x2a   : > { %1039 = vmatpush3.bf16.msra.mxu0 %v1119_v9  ;;  %1087 = vmatpush3.bf16.msra.mxu1 %v1119_v9 }
  0x2d   : > { %1041 = vmatmul.mubr.bf16.vlgmr.msra.gmra.mxu0 %v1122_v10  ;;  %1057 = vmatmul.mubr.bf16.vlgmr.msra.gmra.mxu1 %v1123_v11 }
  0x2e   : > { %1044 = vmatprep.mubr.bf16.mxu0 %v1124_v12  ;;  %1060 = vmatprep.mubr.bf16.mxu1 %v1125_v13 }
  0x35   : > { %1045 = vmatmul.mubr.bf16.gmra.mxu0 %v1126_v14  ;;  %1061 = vmatmul.mubr.bf16.gmra.mxu1 %v1127_v15 }
  0x36   : > { %1048 = vmatprep.mubr.bf16.mxu0 %v1128_v16  ;;  %1064 = vmatprep.mubr.bf16.mxu1 %v1129_v17 }
  0x3d   : > { %1049 = vmatmul.mubr.bf16.gmra.mxu0 %v1130_v18  ;;  %1065 = vmatmul.mubr.bf16.gmra.mxu1 %v1131_v19 }
  0x3e   : > { %1052 = vmatprep.mubr.bf16.mxu0 %v1132_v20  ;;  %1068 = vmatprep.mubr.bf16.mxu1 %v1133_v21 }
  0x45   : > { %1053 = vmatmul.mubr.bf16.gmra.mxu0 %v1134_v22  ;;  %1069 = vmatmul.mubr.bf16.gmra.mxu1 %v1135_v23 }
  0xed   : > { %v1042_v25 = vpop.f32.mrf.mxu0  ;;  %v1058_v26 = vpop.f32.mrf.mxu1 }
  0xee   : > { %v789_v27 = vadd.f32 %v1042_v25, %v1250_v24  ;;  %v805_v28 = vadd.f32 %v1058_v26, %v1250_v24 }
  0xef   : > { %v554_v29 = vpop.f32.mrf.mxu0  ;;  %v618_v30 = vpop.f32.mrf.mxu1 }
  0xf0   : > { %821 = vst [vmem:[%s1255_s19 + $0x10] sm:$0xff] %v789_v27  ;;  %837 = vst [vmem:[%s1255_s19 + $0x90] sm:$0xff] %v805_v28  ;;  %v787_v31 = vadd.f32 %v1250_v24, %v554_v29  ;;  %v803_v32 = vadd.f32 %v1250_v24, %v618_v30 }
  0xf1   : > { %v1043_v33 = vpop.f32.mrf.mxu0  ;;  %v1059_v34 = vpop.f32.mrf.mxu1 }
  0xf2   : > { %819 = vst [vmem:[%s1255_s19] sm:$0xff] %v787_v31  ;;  %835 = vst [vmem:[%s1255_s19 + $0x80] sm:$0xff] %v803_v32  ;;  %v790_v35 = vadd.f32 %v1043_v33, %v1250_v24  ;;  %v806_v36 = vadd.f32 %v1059_v34, %v1250_v24 }
  0xf3   : > { %v557_v37 = vpop.f32.mrf.mxu0  ;;  %v621_v38 = vpop.f32.mrf.mxu1 }
  0xf4   : > { %822 = vst [vmem:[%s1255_s19 + $0x18] sm:$0xff] %v790_v35  ;;  %838 = vst [vmem:[%s1255_s19 + $0x98] sm:$0xff] %v806_v36  ;;  %v788_v39 = vadd.f32 %v1250_v24, %v557_v37  ;;  %v804_v40 = vadd.f32 %v1250_v24, %v621_v38 }
  0xf5   : > { %v1046_v41 = vpop.f32.mrf.mxu0  ;;  %v1062_v42 = vpop.f32.mrf.mxu1 }
  0xf6   : > { %820 = vst [vmem:[%s1255_s19 + $0x8] sm:$0xff] %v788_v39  ;;  %836 = vst [vmem:[%s1255_s19 + $0x88] sm:$0xff] %v804_v40  ;;  %v793_v43 = vadd.f32 %v1046_v41, %v1250_v24  ;;  %v809_v44 = vadd.f32 %v1062_v42, %v1250_v24 }
  0xf7   : > { %v570_v45 = vpop.f32.mrf.mxu0  ;;  %v634_v46 = vpop.f32.mrf.mxu1 }
  0xf8   : > { %825 = vst [vmem:[%s1255_s19 + $0x30] sm:$0xff] %v793_v43  ;;  %841 = vst [vmem:[%s1255_s19 + $0xb0] sm:$0xff] %v809_v44  ;;  %v791_v47 = vadd.f32 %v1250_v24, %v570_v45  ;;  %v807_v48 = vadd.f32 %v1250_v24, %v634_v46 }
  0xf9   : > { %v1047_v49 = vpop.f32.mrf.mxu0  ;;  %v1063_v50 = vpop.f32.mrf.mxu1 }
  0xfa   : > { %823 = vst [vmem:[%s1255_s19 + $0x20] sm:$0xff] %v791_v47  ;;  %839 = vst [vmem:[%s1255_s19 + $0xa0] sm:$0xff] %v807_v48  ;;  %v794_v51 = vadd.f32 %v1047_v49, %v1250_v24  ;;  %v810_v52 = vadd.f32 %v1063_v50, %v1250_v24 }
  0xfb   : > { %v573_v53 = vpop.f32.mrf.mxu0  ;;  %v637_v54 = vpop.f32.mrf.mxu1 }
  0xfc   : > { %826 = vst [vmem:[%s1255_s19 + $0x38] sm:$0xff] %v794_v51  ;;  %842 = vst [vmem:[%s1255_s19 + $0xb8] sm:$0xff] %v810_v52  ;;  %v792_v55 = vadd.f32 %v1250_v24, %v573_v53  ;;  %v808_v56 = vadd.f32 %v1250_v24, %v637_v54 }
  0xfd   : > { %v1050_v57 = vpop.f32.mrf.mxu0  ;;  %v1066_v58 = vpop.f32.mrf.mxu1 }
  0xfe   : > { %824 = vst [vmem:[%s1255_s19 + $0x28] sm:$0xff] %v792_v55  ;;  %840 = vst [vmem:[%s1255_s19 + $0xa8] sm:$0xff] %v808_v56  ;;  %v797_v59 = vadd.f32 %v1050_v57, %v1250_v24  ;;  %v813_v60 = vadd.f32 %v1066_v58, %v1250_v24 }
  0xff   : > { %v586_v61 = vpop.f32.mrf.mxu0  ;;  %v650_v62 = vpop.f32.mrf.mxu1 }
 0x100   : > { %829 = vst [vmem:[%s1255_s19 + $0x50] sm:$0xff] %v797_v59  ;;  %845 = vst [vmem:[%s1255_s19 + $0xd0] sm:$0xff] %v813_v60  ;;  %v795_v63 = vadd.f32 %v1250_v24, %v586_v61  ;;  %v811_v0 = vadd.f32 %v1250_v24, %v650_v62 }
 0x101   : > { %v1051_v1 = vpop.f32.mrf.mxu0  ;;  %v1067_v2 = vpop.f32.mrf.mxu1 }
 0x102   : > { %827 = vst [vmem:[%s1255_s19 + $0x40] sm:$0xff] %v795_v63  ;;  %843 = vst [vmem:[%s1255_s19 + $0xc0] sm:$0xff] %v811_v0  ;;  %v798_v3 = vadd.f32 %v1051_v1, %v1250_v24  ;;  %v814_v4 = vadd.f32 %v1067_v2, %v1250_v24 }
 0x103   : > { %v589_v5 = vpop.f32.mrf.mxu0  ;;  %v653_v6 = vpop.f32.mrf.mxu1 }
 0x104   : > { %830 = vst [vmem:[%s1255_s19 + $0x58] sm:$0xff] %v798_v3  ;;  %846 = vst [vmem:[%s1255_s19 + $0xd8] sm:$0xff] %v814_v4  ;;  %v796_v7 = vadd.f32 %v1250_v24, %v589_v5  ;;  %v812_v8 = vadd.f32 %v1250_v24, %v653_v6 }
 0x105   : > { %v1054_v9 = vpop.f32.mrf.mxu0  ;;  %v1070_v10 = vpop.f32.mrf.mxu1 }
 0x106   : > { %828 = vst [vmem:[%s1255_s19 + $0x48] sm:$0xff] %v796_v7  ;;  %844 = vst [vmem:[%s1255_s19 + $0xc8] sm:$0xff] %v812_v8  ;;  %v801_v11 = vadd.f32 %v1054_v9, %v1250_v24  ;;  %v817_v12 = vadd.f32 %v1070_v10, %v1250_v24 }
 0x107   : > { %v602_v13 = vpop.f32.mrf.mxu0  ;;  %v666_v14 = vpop.f32.mrf.mxu1 }
 0x108   : > { %833 = vst [vmem:[%s1255_s19 + $0x70] sm:$0xff] %v801_v11  ;;  %849 = vst [vmem:[%s1255_s19 + $0xf0] sm:$0xff] %v817_v12  ;;  %v799_v15 = vadd.f32 %v1250_v24, %v602_v13  ;;  %v815_v16 = vadd.f32 %v1250_v24, %v666_v14 }
 0x109   : > { %v1055_v17 = vpop.f32.mrf.mxu0  ;;  %v1071_v18 = vpop.f32.mrf.mxu1 }
 0x10a   : > { %831 = vst [vmem:[%s1255_s19 + $0x60] sm:$0xff] %v799_v15  ;;  %847 = vst [vmem:[%s1255_s19 + $0xe0] sm:$0xff] %v815_v16  ;;  %v802_v19 = vadd.f32 %v1055_v17, %v1250_v24  ;;  %v818_v20 = vadd.f32 %v1071_v18, %v1250_v24 }
 0x10b   : > { %v605_v21 = vpop.f32.mrf.mxu0  ;;  %v669_v22 = vpop.f32.mrf.mxu1 }
 0x10c   : > { %834 = vst [vmem:[%s1255_s19 + $0x78] sm:$0xff] %v802_v19  ;;  %850 = vst [vmem:[%s1255_s19 + $0xf8] sm:$0xff] %v818_v20  ;;  %v800_v23 = vadd.f32 %v1250_v24, %v605_v21  ;;  %v816_v25 = vadd.f32 %v1250_v24, %v669_v22 }
 0x10e   : > { %832 = vst [vmem:[%s1255_s19 + $0x68] sm:$0xff] %v800_v23  ;;  %848 = vst [vmem:[%s1255_s19 + $0xe8] sm:$0xff] %v816_v25 }
 0x10f PF: > { %s13_s14 = sadd.s32 1, %s1158_s14   ;;  %s1334_s12 = smov %s1154_s13 }
 0x110   : > { %p10_p5 = scmp.ge.s32.totalorder %s13_s14, 4   ;;  %s1335_s13 = smov %s1337_s15 }
 0x112   :  { %12 = sbr.rel (!%p10_p5) target bundleno = 2 (0x2), region = 76 }

</bundles_post_ra>
